<compile_context>
chip_gen: v6e
topology: v6e:2x2x1
jax: 0.10.0
libtpu: 0.0.40
codegen_flags: <defaults>
</compile_context>

<pallas_src>
import math

import jax
import jax.numpy as jnp
from jax.experimental import pallas as pl
from jax.experimental.pallas import tpu as pltpu


def _round_up(v, m):
    return ((v + m - 1) // m) * m


# ----------------------------------------------------------------------------
# Pallas kernel: logits = x @ W_packed + b (bf16 operands, f32 MXU accumulate),
# then grouped softmax over every E-wide lane segment. All N samples in one shot.
# ----------------------------------------------------------------------------
def _gating_kernel(x_ref, w_ref, b_ref, mask_ref, o_ref):
    # Cast the x tile to bf16 *inside* the kernel: x streams from HBM once in
    # its native f32; the convert happens on-chip under the pipeline.
    x_bf = x_ref[...].astype(jnp.bfloat16)
    logits = jnp.dot(x_bf, w_ref[...],
                     preferred_element_type=jnp.float32) + b_ref[...]    # (TB, Lp) f32
    # Row-global max is a uniform constant within every E-wide segment, so the
    # per-segment softmax is unchanged and exp() cannot overflow.
    m = jnp.max(logits, axis=-1, keepdims=True)
    e = jnp.exp(logits - m)                                              # f32
    # Per-segment sums via a block-diagonal 0/1 mask matmul (0/1 exact in
    # bf16; f32 accumulate). Lane-dense, no in-kernel reshapes.
    seg_sum = jnp.dot(e.astype(jnp.bfloat16), mask_ref[...],
                      preferred_element_type=jnp.float32)
    # Floor guards the exp-underflow edge case (whole segment ~88+ below the
    # row max): that segment's output becomes 0 instead of inf/NaN.
    seg_sum = jnp.maximum(seg_sum, 1e-30)
    # Divide on the EUP (approx reciprocal) instead of the VALU.
    o_ref[...] = (e * pl.reciprocal(seg_sum, approx=True)).astype(o_ref.dtype)


def _choose_batch_tile(B, D, Lp):
    # Budget the double-buffered f32 x tile + f32 output tile to ~20 MiB so the
    # kernel fits v5e's 16 MiB default scoped VMEM (limit raised below), v6e's
    # 32 MiB default scoped VMEM and v7x's 64 MiB physical VMEM.
    x_budget = 20 * 1024 * 1024
    per_row = 2 * D * 4 + 2 * Lp * 4
    tb = max(8, min(1024, (x_budget // per_row) // 8 * 8))
    if B >= 16:
        # Keep >=2 grid steps whenever the batch is splittable, so the
        # "parallel" batch axis can shard across v7x's two TensorCores.
        tb = min(tb, _round_up((B + 1) // 2, 8))
    tb = min(tb, _round_up(B, 8))
    return max(tb, 8)


def _gating_pallas(x, w_packed, b_packed, num_experts):
    """x: (B, D) f32, w_packed: (D, L) f32, b_packed: (1, L) f32, L = N*E.

    Returns (B, L) f32 with a softmax over every contiguous E-wide segment.
    """
    B, D = x.shape
    L = w_packed.shape[1]
    Lp = _round_up(L, 128)   # lane-dense lane axis: full vregs, unmasked stores

    # Zero-pad the packed lane axis to a multiple of 128. Pad lanes get zero
    # weights/bias and each its own softmax segment, so they never mix with a
    # real segment; they are sliced off after the call. (Tiny (D, Lp) copy.)
    if Lp != L:
        w_packed = jnp.pad(w_packed, ((0, 0), (0, Lp - L)))
        b_packed = jnp.pad(b_packed, ((0, 0), (0, Lp - L)))

    lane = jnp.arange(Lp, dtype=jnp.int32)
    seg = jnp.where(lane < L, lane // num_experts, L + lane)
    mask = (seg[:, None] == seg[None, :]).astype(jnp.bfloat16)           # (Lp, Lp)

    w_bf = w_packed.astype(jnp.bfloat16)   # small (D, Lp), DMA'd once (constant map)
    b_f32 = b_packed.astype(jnp.float32)

    TB = _choose_batch_tile(B, D, Lp)
    grid = (pl.cdiv(B, TB),)               # no jnp.pad of x: tail block is masked

    vmem_bytes = int(
        2 * TB * D * 4            # double-buffered f32 x tile
        + 2 * TB * Lp * 4         # double-buffered f32 output tile
        + 2 * D * Lp * 2          # bf16 packed weights
        + 2 * Lp * 4              # f32 bias
        + 2 * Lp * Lp * 2         # bf16 segment mask
        + 6 * TB * Lp * 4         # f32 temporaries (logits / e / seg_sum)
        + (2 << 20))              # slack
    vmem_limit = int(min(max(vmem_bytes, 4 << 20), 56 << 20))

    cost = pl.CostEstimate(
        flops=2 * B * D * Lp + 2 * B * Lp * Lp,
        transcendentals=B * Lp,
        bytes_accessed=B * D * 4 + D * Lp * 2 + Lp * Lp * 2 + Lp * 4 + B * Lp * 4)

    out = pl.pallas_call(
        _gating_kernel,
        out_shape=jax.ShapeDtypeStruct((B, Lp), jnp.float32),
        grid_spec=pltpu.PrefetchScalarGridSpec(
            num_scalar_prefetch=0,
            grid=grid,
            in_specs=[
                pl.BlockSpec((TB, D), lambda i: (i, 0)),    # x tile per step (native f32)
                pl.BlockSpec((D, Lp), lambda i: (0, 0)),    # packed weights (constant)
                pl.BlockSpec((1, Lp), lambda i: (0, 0)),    # packed bias (constant)
                pl.BlockSpec((Lp, Lp), lambda i: (0, 0)),   # segment mask (constant)
            ],
            out_specs=pl.BlockSpec((TB, Lp), lambda i: (i, 0)),
        ),
        compiler_params=pltpu.CompilerParams(
            dimension_semantics=("parallel",),
            vmem_limit_bytes=vmem_limit),
        cost_estimate=cost,
    )(x.astype(jnp.float32), w_bf, b_f32, mask)
    return out[:, :L]


# ----------------------------------------------------------------------------
# Parameter construction (deterministic, mirrors BayesianLinear.__init__)
# ----------------------------------------------------------------------------
def _truncated_normal(key, shape, mean, std, a, b):
    # PyTorch helper: normal_(mean, std) then clamp_(a, b)
    v = mean + std * jax.random.normal(key, shape, dtype=jnp.float32)
    return jnp.clip(v, a, b)


def init_bayesian_linear_params(key, in_features, out_features, prior_std=1.0):
    k_w, k_wl = jax.random.split(key)
    weight_mu = _truncated_normal(
        k_w, (out_features, in_features), 0.0, prior_std,
        -2.0 * prior_std, 2.0 * prior_std)
    log_var_mean = math.log(prior_std ** 2)
    log_var_std = prior_std / 10.0
    weight_logvar = _truncated_normal(
        k_wl, (out_features, in_features), log_var_mean, log_var_std,
        log_var_mean - 2.0 * log_var_std, log_var_mean + 2.0 * log_var_std)
    bias_mu = jnp.zeros((out_features,), jnp.float32)
    bias_logvar = jnp.full((out_features,), log_var_mean, jnp.float32)
    return dict(weight_mu=weight_mu, weight_logvar=weight_logvar,
                bias_mu=bias_mu, bias_logvar=bias_logvar)


# ----------------------------------------------------------------------------
# Weight/bias sampling directly in the packed (D, N*E) layout
# (reparameterization trick; no big transpose afterwards).
# ----------------------------------------------------------------------------
def _build_sampled_params(params, num_samples, key):
    w_mu_t = params["weight_mu"].T                         # (D, E), tiny transpose
    b_mu = params["bias_mu"]                               # (E,)
    D, E = w_mu_t.shape
    if num_samples == 0:
        # MAP estimate: use the means.
        return w_mu_t, b_mu[None, :], 1
    n = max(num_samples, 1)
    w_std_t = jnp.exp(0.5 * params["weight_logvar"]).T     # (D, E)
    b_std = jnp.exp(0.5 * params["bias_logvar"])           # (E,)
    kw, kb = jax.random.split(key)
    eps_w = jax.random.normal(kw, (D, n, E), dtype=jnp.float32)
    eps_b = jax.random.normal(kb, (n, E), dtype=jnp.float32)
    w = (w_mu_t[:, None, :] + w_std_t[:, None, :] * eps_w).reshape(D, n * E)
    b = (b_mu[None, :] + b_std[None, :] * eps_b).reshape(1, n * E)
    return w, b, n


# ----------------------------------------------------------------------------
# Forward wrapper reproducing BayesianGatingNetwork.forward semantics
# ----------------------------------------------------------------------------
def bayesian_gating_forward(params, x, num_samples, key):
    """
    x: (B, D) float32.
    Returns:
      (B, E)    if num_samples <= 1   (MAP estimate or single reparam sample)
      (N, B, E) if num_samples  > 1   (per-sample softmax outputs)
    """
    E = params["bias_mu"].shape[0]
    B = x.shape[0]
    w_packed, b_packed, n = _build_sampled_params(params, num_samples, key)
    alpha_packed = _gating_pallas(x.astype(jnp.float32), w_packed, b_packed, E)
    alpha = alpha_packed.reshape(B, n, E)                  # tiny layout plumbing
    if num_samples <= 1:
        return alpha[:, 0, :]                              # (B, E)
    return jnp.transpose(alpha, (1, 0, 2))                 # (N, B, E)


# ----------------------------------------------------------------------------
# Plain-JAX reference (same bf16 matmul inputs so tolerances are tight)
# ----------------------------------------------------------------------------
def _ref_forward_packed(x, w_packed, b_packed, num_experts):
    logits = jnp.dot(x.astype(jnp.bfloat16), w_packed.astype(jnp.bfloat16),
                     preferred_element_type=jnp.float32) + b_packed
    B, L = logits.shape
    lg = logits.reshape(B, L // num_experts, num_experts)
    return jax.nn.softmax(lg, axis=-1)                     # (B, N, E)


if __name__ == "__main__":
    key = jax.random.PRNGKey(0)
    k_param, k_x, k_samp = jax.random.split(key, 3)

    B, D, E, N = 8, 32, 3, 4   # batch, in_features, num_experts, num_samples

    params = init_bayesian_linear_params(k_param, D, E, prior_std=1.0)
    x = jax.random.normal(k_x, (B, D), dtype=jnp.float32)

    # num_samples > 1 path: output (N, B, E)
    alpha_multi = bayesian_gating_forward(params, x, N, k_samp)
    alpha_multi = jax.block_until_ready(alpha_multi)
    assert alpha_multi.shape == (N, B, E)

    # num_samples == 1 path: output (B, E)
    alpha_one = bayesian_gating_forward(params, x, 1, k_samp)
    alpha_one = jax.block_until_ready(alpha_one)
    assert alpha_one.shape == (B, E)

    # MAP path (num_samples == 0): output (B, E)
    alpha_map = bayesian_gating_forward(params, x, 0, k_samp)
    alpha_map = jax.block_until_ready(alpha_map)
    assert alpha_map.shape == (B, E)

    # Sanity 1: softmax rows sum to 1 (bf16 seg-sum + approx reciprocal -> loose tol).
    assert jnp.allclose(jnp.sum(alpha_multi, axis=-1), 1.0, atol=1e-2)
    assert jnp.allclose(jnp.sum(alpha_map, axis=-1), 1.0, atol=1e-2)

    # Sanity 2: multi-sample path matches a plain-JAX reference built from the
    # SAME sampled packed weights (same RNG key).
    w_p, b_p, n = _build_sampled_params(params, N, k_samp)
    ref_multi = jnp.transpose(_ref_forward_packed(x, w_p, b_p, E), (1, 0, 2))
    assert jnp.allclose(alpha_multi, ref_multi, atol=1e-2), "multi-sample mismatch"

    # Sanity 3: MAP path matches the reference on the mean weights.
    w_m, b_m, _ = _build_sampled_params(params, 0, k_samp)
    ref_map = _ref_forward_packed(x, w_m, b_m, E)[:, 0, :]
    assert jnp.allclose(alpha_map, ref_map, atol=1e-2), "MAP mismatch"

    print("KERNEL_OK")
</pallas_src>

<mosaic_0001>
module attributes {stable_mosaic.version = 11 : i64} {
  func.func @_gating_kernel(%arg0: i32, %arg1: memref<8x32xf32, #tpu.memory_space<vmem>>, %arg2: memref<32x128xbf16, #tpu.memory_space<vmem>>, %arg3: memref<1x128xf32, #tpu.memory_space<vmem>>, %arg4: memref<128x128xbf16, #tpu.memory_space<vmem>>, %arg5: memref<8x128xf32, #tpu.memory_space<vmem>>) attributes {dimension_semantics = [#tpu.dimension_semantics<parallel>], iteration_bounds = array<i64: 1>, scalar_prefetch = 0 : i64, scratch_operands = 0 : i64, tpu.core_type = #tpu.core_type<tc>, window_params = [{transform_indices = @transform_0, window_bounds = array<i64: 8, 32>}, {pipeline_mode = #tpu.pipeline_mode<synchronous>, transform_indices = @transform_1, window_bounds = array<i64: 32, 128>}, {pipeline_mode = #tpu.pipeline_mode<synchronous>, transform_indices = @transform_2, window_bounds = array<i64: 1, 128>}, {pipeline_mode = #tpu.pipeline_mode<synchronous>, transform_indices = @transform_3, window_bounds = array<i64: 128, 128>}, {transform_indices = @transform_4, window_bounds = array<i64: 8, 128>}]} {
    %c0 = arith.constant 0 : index
    %c0_0 = arith.constant 0 : index
    %0 = vector.load %arg1[%c0, %c0_0] : memref<8x32xf32, #tpu.memory_space<vmem>>, vector<8x32xf32>
    %1 = arith.truncf %0 : vector<8x32xf32> to vector<8x32xbf16>
    %c0_1 = arith.constant 0 : index
    %c0_2 = arith.constant 0 : index
    %2 = vector.load %arg2[%c0_1, %c0_2] : memref<32x128xbf16, #tpu.memory_space<vmem>>, vector<32x128xbf16>
    %cst = arith.constant dense<0.000000e+00> : vector<8x128xf32>
    %3 = tpu.matmul %1, %2, %cst {dimension_numbers = #tpu.dot_dimension_numbers<[1], [0], [0], [1], [0, 0, 1, 1], [], []>} : vector<8x32xbf16>, vector<32x128xbf16>, vector<8x128xf32> -> vector<8x128xf32>
    %c0_3 = arith.constant 0 : index
    %c0_4 = arith.constant 0 : index
    %4 = vector.load %arg3[%c0_3, %c0_4] : memref<1x128xf32, #tpu.memory_space<vmem>>, vector<1x128xf32>
    %5 = vector.broadcast %4 : vector<1x128xf32> to vector<8x128xf32>
    %6 = arith.addf %3, %5 : vector<8x128xf32>
    %cst_5 = arith.constant dense<0xFF800000> : vector<8xf32>
    %7 = vector.multi_reduction <maximumf>, %6, %cst_5 [1] : vector<8x128xf32> to vector<8xf32>
    %8 = vector.shape_cast %7 : vector<8xf32> to vector<8x1xf32>
    %9 = vector.broadcast %8 : vector<8x1xf32> to vector<8x128xf32>
    %10 = arith.subf %6, %9 : vector<8x128xf32>
    %11 = math.exp %10 : vector<8x128xf32>
    %12 = arith.truncf %11 : vector<8x128xf32> to vector<8x128xbf16>
    %c0_6 = arith.constant 0 : index
    %c0_7 = arith.constant 0 : index
    %13 = vector.load %arg4[%c0_6, %c0_7] : memref<128x128xbf16, #tpu.memory_space<vmem>>, vector<128x128xbf16>
    %cst_8 = arith.constant dense<0.000000e+00> : vector<8x128xf32>
    %14 = tpu.matmul %12, %13, %cst_8 {dimension_numbers = #tpu.dot_dimension_numbers<[1], [0], [0], [1], [0, 0, 1, 1], [], []>} : vector<8x128xbf16>, vector<128x128xbf16>, vector<8x128xf32> -> vector<8x128xf32>
    %cst_9 = arith.constant 1.000000e-30 : f32
    %15 = vector.broadcast %cst_9 : f32 to vector<8x128xf32>
    %16 = arith.maximumf %14, %15 : vector<8x128xf32>
    %17 = tpu.reciprocal %16 {approx = true} : vector<8x128xf32> -> vector<8x128xf32>
    %18 = arith.mulf %11, %17 : vector<8x128xf32>
    %c0_10 = arith.constant 0 : index
    %c0_11 = arith.constant 0 : index
    %19 = vector.load %arg5[%c0_10, %c0_11] : memref<8x128xf32, #tpu.memory_space<vmem>>, vector<8x128xf32>
    tpu.vector_store %arg5[%c0_10, %c0_11], %18 {strides = array<i32>} : memref<8x128xf32, #tpu.memory_space<vmem>>, vector<8x128xf32>,
    return
  }
  func.func @transform_0(%arg0: i32) -> (i32, i32) {
    %c0_i32 = arith.constant 0 : i32
    %c0_i32_0 = arith.constant 0 : i32
    return %arg0, %c0_i32 : i32, i32
  }
  func.func @transform_1(%arg0: i32) -> (i32, i32) {
    %c0_i32 = arith.constant 0 : i32
    %c0_i32_0 = arith.constant 0 : i32
    %c0_i32_1 = arith.constant 0 : i32
    return %c0_i32, %c0_i32_0 : i32, i32
  }
  func.func @transform_2(%arg0: i32) -> (i32, i32) {
    %c0_i32 = arith.constant 0 : i32
    %c0_i32_0 = arith.constant 0 : i32
    %c0_i32_1 = arith.constant 0 : i32
    return %c0_i32, %c0_i32_0 : i32, i32
  }
  func.func @transform_3(%arg0: i32) -> (i32, i32) {
    %c0_i32 = arith.constant 0 : i32
    %c0_i32_0 = arith.constant 0 : i32
    %c0_i32_1 = arith.constant 0 : i32
    return %c0_i32, %c0_i32_0 : i32, i32
  }
  func.func @transform_4(%arg0: i32) -> (i32, i32) {
    %c0_i32 = arith.constant 0 : i32
    %c0_i32_0 = arith.constant 0 : i32
    return %arg0, %c0_i32 : i32, i32
  }
}

</mosaic_0001>

<bundles_post_ra>
// kernel: tpu_custom_call.1
= control target key start
LH: loop header
LB: loop body
LE: loop exit
PB: predicated region body
PF: predicated region fallthrough
CT: control target
= control target key end

     0   :  { %9 = vsyncpa [#allocation3], 0  ;;  %s465_s0 = inlined_call_operand.hbm [shape: f32[8,32], index: 0, kind: input, shape index: {}]   ;;  %s466_s1 = inlined_call_operand.hbm [shape: bf16[32,128], index: 1, kind: input, shape index: {}]   ;;  %s467_s2 = inlined_call_operand.vmem [shape: f32[1,128], index: 2, kind: input, shape index: {}]   ;;  %s468_s3 = inlined_call_operand.hbm [shape: bf16[128,128], index: 3, kind: input, shape index: {}]   ;;  %s469_s4 = inlined_call_operand.hbm [shape: f32[8,128], index: 4, kind: output, shape index: {}]  }
   0x1   :  { %10 = vsyncpa [#allocation6], 0 }
   0x2   :  { %11 = vsyncpa [#allocation4], 0  ;;  %s417_s15 = smov [#allocation5]  }
   0x3   :  { %s27_s16 = sshll.u32 %s417_s15, 4  ;;  %s28_s16 = int_to_ptr.vmem [resolvable:$true] %s27_s16 }
   0x4   :  { %s339_s17 = scalar_lea.vmem %s28_s16, 256  ;;  %p344_p1 = scmp.lt.s32.totalorder %s28_s16, %s28_s16 }
   0x5   :  { %p340_p0 = scmp.ne.s32.totalorder %s28_s16, %s339_s17  ;;  %p345_p2 = scmp.lt.s32.totalorder %s339_s17, %s339_s17 }
   0x7   :  { %p346_p3 = por %p345_p2, %p344_p1 }
   0x9   :  { %p347_p4 = pnand %p346_p3, %p340_p0 }
   0xb   :  { %350 = shalt.err (!%p347_p4)
}
   0xc   :  { %s418_s18 = smov 64   ;;  %s419_s19 = smov 4  }
   0xd   :  { %33 = dma.hbm_to_vmem [thread:$0]  %s466_s1, 256, %s28_s16, [#allocation6], %s418_s18, %s418_s18, %s419_s19  }
   0xe   :  { %s420_s22 = smov [#allocation2]   ;;  %s421_s24 = smov [#allocation7]  }
   0xf   :  { %s18_s23 = sshll.u32 %s420_s22, 4  ;;  %s41_s25 = sshll.u32 %s421_s24, 4  ;;  %s19_s23 = int_to_ptr.vmem [resolvable:$true] %s18_s23  ;;  %s42_s25 = int_to_ptr.vmem [resolvable:$true] %s41_s25 }
  0x10   :  { %s359_s26 = scalar_lea.vmem %s19_s23, 128  ;;  %p364_p6 = scmp.lt.s32.totalorder %s19_s23, %s19_s23 }
  0x11   :  { %p360_p5 = scmp.ne.s32.totalorder %s19_s23, %s359_s26  ;;  %p365_p7 = scmp.lt.s32.totalorder %s359_s26, %s359_s26 }
  0x13   :  { %p366_p8 = por %p365_p7, %p364_p6 }
  0x15   :  { %p367_p9 = pnand %p366_p8, %p360_p5 }
  0x17   :  { %370 = shalt.err (!%p367_p9)
}
  0x18   :  { %21 = dma.hbm_to_vmem [thread:$0]  %s465_s0, 128, %s19_s23, [#allocation3]  }
  0x19   :  { %s379_s29 = scalar_lea.vmem %s42_s25, 1024  ;;  %p384_p11 = scmp.lt.s32.totalorder %s42_s25, %s42_s25 }
  0x1a   :  { %p380_p10 = scmp.ne.s32.totalorder %s42_s25, %s379_s29  ;;  %p385_p12 = scmp.lt.s32.totalorder %s379_s29, %s379_s29 }
  0x1c   :  { %p386_p13 = por %p385_p12, %p384_p11 }
  0x1e   :  { %p387_p0 = pnand %p386_p13, %p380_p10 }
  0x20   :  { %390 = shalt.err (!%p387_p0)
}
  0x21   :  { %47 = dma.hbm_to_vmem [thread:$0]  %s468_s3, 1024, %s42_s25, [#allocation6], %s418_s18, %s418_s18, %s419_s19  }
  0x22   :  { %411 = dma.done.wait [#allocation3], 128  }
  0x23   :  { %412 = vsyncadd [#allocation3], 4294967168 }
  0x24   :  { %413 = dma.done.wait [#allocation6], 1280  }
  0x25   :  { %414 = vsyncadd [#allocation6], 4294966016  ;;  %v422_v0 = vmov 0.0   ;;  %vm423_vm0 = vmmov 0   ;;  %v317_v1 = vld [vmem:[#allocation5 + $0x8] sm:$0xff]   ;;  %v318_v2 = vld [vmem:[#allocation5] sm:$0xff]  }
  0x26   :  { %281 = vmatprep.subr.bf16.mxu0 %v422_v0  ;;  %285 = vmatprep.mubr.msk.bf16.mxu0 %vm423_vm0, %v422_v0  ;;  %v58_v3 = vld [vmem:[#allocation2] sm:$0xff]  ;;  %vm83_vm1 = vcmask 261120   ;;  %v319_v5 = vld [vmem:[#allocation7 + $0x38] sm:$0xff]   ;;  %v320_v6 = vld [vmem:[#allocation7 + $0x30] sm:$0xff]  }
  0x27   :  { %289 = vmatprep.subr.bf16.mxu1 %v422_v0  ;;  %305 = vmatprep.mubr.msk.bf16.mxu1 %vm423_vm0, %v422_v0  ;;  %v59_v4 = vpack.c.bf16 %v58_v3, %v58_v3  ;;  %v321_v7 = vld [vmem:[#allocation7 + $0x28] sm:$0xff]   ;;  %v322_v14 = vld [vmem:[#allocation7 + $0x20] sm:$0xff]   ;;  %v323_v15 = vld [vmem:[#allocation7 + $0x18] sm:$0xff]  }
  0x28   :  { %282 = vmatpush3.bf16.msra.mxu0 %v317_v1  ;;  %290 = vmatpush3.bf16.msra.mxu1 %v319_v5  ;;  %v257_v8 = vld [vmem:[%s467_s2] ss:$0 sm:$0xff]  ;;  %v324_v16 = vld [vmem:[#allocation7 + $0x10] sm:$0xff]   ;;  %v326_v18 = vld [vmem:[#allocation7] sm:$0xff]   ;;  %s424_s2 = smov [#allocation8]  }
  0x29   :  { %283 = vmatprep.subr.bf16.mxu0 %v422_v0  ;;  %291 = vmatprep.subr.bf16.mxu1 %v422_v0  ;;  %v325_v17 = vld [vmem:[#allocation7 + $0x8] sm:$0xff]   ;;  %s247_s5 = sshll.u32 %s424_s2, 4  ;;  %s248_s5 = int_to_ptr.vmem [resolvable:$true] %s247_s5 }
  0x2a   :  { %s391_s6 = scalar_lea.vmem %s248_s5, 128  ;;  %p396_p2 = scmp.lt.s32.totalorder %s248_s5, %s248_s5 }
  0x2b   :  { %p392_p1 = scmp.ne.s32.totalorder %s248_s5, %s391_s6  ;;  %p397_p3 = scmp.lt.s32.totalorder %s391_s6, %s391_s6 }
  0x2c   :  { %284 = vmatpush3.bf16.msra.mxu0 %v318_v2  ;;  %292 = vmatpush3.bf16.msra.mxu1 %v320_v6 }
  0x2d   :  { %293 = vmatprep.subr.bf16.mxu1 %v422_v0  ;;  %p398_p4 = por %p397_p3, %p396_p2 }
  0x2f   :  { %286 = vmatmul.mubr.msk.bf16.vlgmr.msra.gmra.mxu0 %vm83_vm1, %v59_v4  ;;  %p399_p5 = pnand %p398_p4, %p392_p1 }
  0x30   :  { %294 = vmatpush3.bf16.msra.mxu1 %v321_v7 }
  0x31   :  { %295 = vmatprep.subr.bf16.mxu1 %v422_v0 }
  0x34   :  { %296 = vmatpush3.bf16.msra.mxu1 %v322_v14 }
  0x35   :  { %297 = vmatprep.subr.bf16.mxu1 %v422_v0 }
  0x38   :  { %298 = vmatpush3.bf16.msra.mxu1 %v323_v15 }
  0x39   :  { %299 = vmatprep.subr.bf16.mxu1 %v422_v0 }
  0x3c   :  { %300 = vmatpush3.bf16.msra.mxu1 %v324_v16 }
  0x3d   :  { %301 = vmatprep.subr.bf16.mxu1 %v422_v0 }
  0x40   :  { %302 = vmatpush3.bf16.msra.mxu1 %v325_v17 }
  0x41   :  { %303 = vmatprep.subr.bf16.mxu1 %v422_v0 }
  0x44   :  { %304 = vmatpush3.bf16.msra.mxu1 %v326_v18 }
  0xef   :  { %v121_v9 = vpop.f32.mrf.mxu0 }
  0xf0   :  { %v122_v10 = vadd.f32 %v257_v8, %v121_v9 }
  0xf1   :  { %v287_v11 = vpop.f32.mrf.mxu0 }
  0xf2   :  { %127 = vmax.xlane.f32.xlu0 %v122_v10 }
  0xf3   :  { %v124_v12 = vpop.f32.mrf.mxu0 }
  0xf5   :  { %v288_v13 = vpop.f32.mrf.mxu0 }
 0x17b   :  { %v128_v19 = vpop.xlane.xlu0 %127 }
 0x17c   :  { %v129_v20 = vsub.f32 %v122_v10, %v128_v19 }
 0x17e   :  { %v130_v21 = vmul.f32 1.442695, %v129_v20 }
 0x180   :  { %327 = vpow2.f32 %v130_v21 }
 0x18d   :  { %v328_v22 = vpop.eup %327 }
 0x18e   :  { %v132_v23 = vpack.c.bf16 %v328_v22, %v328_v22 }
 0x190   :  { %306 = vmatmul.mubr.bf16.vlgmr.msra.gmra.mxu1 %v132_v23 }
 0x250   :  { %v231_v24 = vpop.f32.mrf.mxu1 }
 0x251   :  { %v237_v25 = vmax.f32 %v231_v24, 1e-30 }
 0x252   :  { %v307_v26 = vpop.f32.mrf.mxu1 }
 0x253   :  { %329 = vrcp.f32 %v237_v25 }
 0x254   :  { %v234_v27 = vpop.f32.mrf.mxu1 }
 0x256   :  { %v308_v28 = vpop.f32.mrf.mxu1 }
 0x260   :  { %v330_v29 = vpop.eup %329 }
 0x261   :  { %v239_v30 = vmul.f32 %v330_v29, %v328_v22 }
 0x263   :  { %240 = vst [vmem:[#allocation8] sm:$0xff] %v239_v30 }
 0x264   :  { %402 = shalt.err (!%p399_p5)
}
 0x265   :  { %250 = dma.vmem_to_hbm [thread:$0]  %s248_s5, 128, %s469_s4, [#allocation4]  }
 0x266   :  { %415 = dma.done.wait [#allocation4], 128  }
 0x267   :  { %416 = vsyncadd [#allocation4], 4294967168 }
 0x268   :  { %254 = vsyncpa [#allocation3], 1 }
 0x269   :  { %255 = vsyncpa [#allocation6], 1 }
 0x26a   :  { %256 = vsyncpa [#allocation4], 1 }

</bundles_post_ra>
